<compile_context>
chip_gen: v5e
topology: v5e:2x2
jax: 0.10.0
libtpu: 0.0.40
codegen_flags: <defaults>
</compile_context>

<pallas_src>
import jax
import jax.numpy as jnp
from jax import lax
from jax.experimental import pallas as pl
from jax.experimental.pallas import tpu as pltpu


_SUB = 16              # sub-image side: every sub-grid in this network is 16x16
_NPIX = _SUB * _SUB    # 256 lanes per sub-image (2 x 128 -> lane-aligned slices)

_ROLL_SIGN = None


def _roll_sign():
    """+1 if pltpu.roll matches jnp.roll's shift direction, -1 if reversed (probed once)."""
    global _ROLL_SIGN
    if _ROLL_SIGN is None:
        x = jnp.arange(8 * 128, dtype=jnp.int32).reshape(8, 128)

        def _probe(x_ref, o_ref):
            o_ref[...] = pltpu.roll(x_ref[...], 1, 1)

        r = pl.pallas_call(_probe, out_shape=jax.ShapeDtypeStruct((8, 128), jnp.int32))(x)
        if bool(jnp.array_equal(r, jnp.roll(x, 1, axis=1))):
            _ROLL_SIGN = 1
        elif bool(jnp.array_equal(r, jnp.roll(x, -1, axis=1))):
            _ROLL_SIGN = -1
        else:
            raise RuntimeError("unexpected pltpu.roll semantics")
    return _ROLL_SIGN


# --------------------------------------------------------------------------
# In-kernel helpers (all shapes static; loops unroll at trace time)
# --------------------------------------------------------------------------
def _sub_grid_coords(rows):
    """(i, j) coordinates of each lane of a flattened 16x16 sub-image, shape (rows, 256)."""
    p = lax.broadcasted_iota(jnp.int32, (rows, _NPIX), 1)
    return p // _SUB, p % _SUB


def _tap(chunk, di, dj, ii, jj):
    """out[c, i*16+j] = chunk[c, (i+di)*16 + (j+dj)], zeroed where (i+di, j+dj) leaves
    the 16x16 sub-grid.  di, dj in {-1, 0, 1}; lane rotation runs on the XLU."""
    s = di * _SUB + dj
    if s != 0:
        chunk = pltpu.roll(chunk, (-s * _roll_sign()) % _NPIX, 1)

    keep = None

    def _and(m, c):
        return c if m is None else jnp.logical_and(m, c)

    if di == 1:
        keep = _and(keep, ii != _SUB - 1)
    elif di == -1:
        keep = _and(keep, ii != 0)
    if dj == 1:
        keep = _and(keep, jj != _SUB - 1)
    elif dj == -1:
        keep = _and(keep, jj != 0)
    if keep is not None:
        chunk = jnp.where(keep, chunk, jnp.zeros_like(chunk))
    return chunk


_TAPS = [(sy, sx) for sy in (-1, 0, 1) for sx in (-1, 0, 1)]   # K-dim row order


# --------------------------------------------------------------------------
# Kernels
# --------------------------------------------------------------------------
def fused_cnn_kernel(xs_ref, w1_ref, b1_ref, w2_ref, b2_ref, o_ref,
                     patch1_ref, patch2_ref):
    """conv3x3+bias+ReLU+pool2x2 -> conv3x3+bias+ReLU+pool2x2, ONE image per grid step.

    xs_ref : (16, Cin, 256) bf16  4x4 space-to-depth sub-images of the 64x64 input,
                                  block (a, b) at index a*4+b, channels on sublanes.
    w1_ref : (32, 9*Cin)   bf16   conv1 weight, K ordered (tap, cin).
    b1_ref : (32, 1)       f32
    w2_ref : (C2, 9*32)    bf16   conv2 weight, K ordered (tap, c).
    b2_ref : (C2, 1)       f32
    o_ref  : (C2, 256)     bf16   pooled 16x16 map, channel-major raster order
                                  (== PyTorch's (c, h, w) flatten order).
    patch1_ref : (9*Cin, 16*256) bf16 scratch  layer-1 im2col, columns grouped by (a, b).
    patch2_ref : (9*32,  4*256)  bf16 scratch  layer-2 im2col, columns grouped by parity.
    """
    cin = xs_ref.shape[1]
    c1 = w1_ref.shape[0]
    ii1, jj1 = _sub_grid_coords(cin)
    ii2, jj2 = _sub_grid_coords(c1)

    # ---- layer 1: in-kernel im2col over the 4x4 space-to-depth blocks of the 64 grid ----
    for t, (sy, sx) in enumerate(_TAPS):
        row = []
        for a in range(4):
            for b in range(4):
                src = xs_ref[((a + sy) % 4) * 4 + ((b + sx) % 4)]       # (cin, 256)
                row.append(_tap(src, (a + sy) // 4, (b + sx) // 4, ii1, jj1))
        patch1_ref[t * cin:(t + 1) * cin, :] = jnp.concatenate(row, axis=-1)

    y1 = jnp.dot(w1_ref[...], patch1_ref[...], preferred_element_type=jnp.float32)
    y1 = jnp.maximum(y1 + b1_ref[...], 0.0)                             # (32, 4096) f32

    # ---- pool 1: 2x2 max == max over 4 aligned 256-lane column blocks.  The result
    #      p1[(a1, b1)] is exactly the 2x2 space-to-depth decomposition of the 32x32 map.
    def blk1(a, b):
        s = (a * 4 + b) * _NPIX
        return y1[:, s:s + _NPIX]

    p1 = {}
    for a1 in range(2):
        for b1 in range(2):
            m = jnp.maximum(
                jnp.maximum(blk1(2 * a1, 2 * b1), blk1(2 * a1, 2 * b1 + 1)),
                jnp.maximum(blk1(2 * a1 + 1, 2 * b1), blk1(2 * a1 + 1, 2 * b1 + 1)))
            p1[(a1, b1)] = m.astype(jnp.bfloat16)                       # (32, 256)

    # ---- layer 2: in-kernel im2col over the 2x2 parity blocks of the 32 grid ----
    for t, (sy, sx) in enumerate(_TAPS):
        row = []
        for po in range(2):
            for qo in range(2):
                src = p1[((po + sy) % 2, (qo + sx) % 2)]
                row.append(_tap(src, (po + sy) // 2, (qo + sx) // 2, ii2, jj2))
        patch2_ref[t * c1:(t + 1) * c1, :] = jnp.concatenate(row, axis=-1)

    y2 = jnp.dot(w2_ref[...], patch2_ref[...], preferred_element_type=jnp.float32)
    y2 = jnp.maximum(y2 + b2_ref[...], 0.0)                             # (C2, 1024) f32

    # ---- pool 2: max over the 4 output-parity column blocks -> (C2, 256) raster ----
    o_ref[...] = jnp.maximum(
        jnp.maximum(y2[:, 0:_NPIX], y2[:, _NPIX:2 * _NPIX]),
        jnp.maximum(y2[:, 2 * _NPIX:3 * _NPIX], y2[:, 3 * _NPIX:4 * _NPIX]),
    ).astype(o_ref.dtype)


def fc_kernel(f_ref, w_ref, b_ref, o_ref):
    """Linear layer: (B, K) bf16 @ (K, E) bf16 + bias, f32 accumulation."""
    o_ref[...] = (jnp.dot(f_ref[...], w_ref[...], preferred_element_type=jnp.float32)
                  + b_ref[...])


# --------------------------------------------------------------------------
# One-time weight re-layouts (hoisted out of the per-forward path)
# --------------------------------------------------------------------------
def prepare_params(conv1_w, conv1_b, conv2_w, conv2_b, fc_w, fc_b):
    def conv_flat(w):                       # OIHW -> (O, 9*I), K ordered (ky, kx, ci)
        o, i, kh, kw = w.shape
        return jnp.transpose(w, (0, 2, 3, 1)).reshape(o, kh * kw * i).astype(jnp.bfloat16)

    c1 = conv1_w.shape[0]
    c2 = conv2_w.shape[0]
    e = fc_w.shape[0]
    return dict(
        w1=conv_flat(conv1_w), b1=conv1_b.reshape(c1, 1).astype(jnp.float32),
        w2=conv_flat(conv2_w), b2=conv2_b.reshape(c2, 1).astype(jnp.float32),
        # Features come out in PyTorch's native (c, h, w) flatten order -> no permutation.
        wfc=fc_w.T.astype(jnp.bfloat16),
        bfc=fc_b.reshape(1, e).astype(jnp.float32))


# --------------------------------------------------------------------------
# pallas_call wrappers
# --------------------------------------------------------------------------
def _fused_conv_tower(xs, w1, b1, w2, b2):
    bsz, nblk, cin, npix = xs.shape
    c1 = w1.shape[0]
    c2 = w2.shape[0]
    flops = 2 * bsz * (c1 * 9 * cin * nblk * npix + c2 * 9 * c1 * 4 * npix)
    bytes_accessed = (xs.size * 2 + (w1.size + w2.size) * 2
                      + (b1.size + b2.size) * 4 + bsz * c2 * npix * 2)
    return pl.pallas_call(
        fused_cnn_kernel,
        out_shape=jax.ShapeDtypeStruct((bsz, c2, npix), jnp.bfloat16),
        grid=(bsz,),
        in_specs=[
            pl.BlockSpec((None, nblk, cin, npix), lambda i: (i, 0, 0, 0)),
            pl.BlockSpec((c1, 9 * cin), lambda i: (0, 0)),
            pl.BlockSpec((c1, 1), lambda i: (0, 0)),
            pl.BlockSpec((c2, 9 * c1), lambda i: (0, 0)),
            pl.BlockSpec((c2, 1), lambda i: (0, 0)),
        ],
        out_specs=pl.BlockSpec((None, c2, npix), lambda i: (i, 0, 0)),
        scratch_shapes=[
            pltpu.VMEM((9 * cin, nblk * npix), jnp.bfloat16),   # layer-1 im2col patches
            pltpu.VMEM((9 * c1, 4 * npix), jnp.bfloat16),       # layer-2 im2col patches
        ],
        compiler_params=pltpu.CompilerParams(dimension_semantics=("parallel",)),
        cost_estimate=pl.CostEstimate(flops=flops, transcendentals=0,
                                      bytes_accessed=bytes_accessed),
    )(xs, w1, b1, w2, b2)


def cnn_feat_expert_forward(x_nchw, params):
    """Forward pass matching CNNFeatExpert.forward (params pre-permuted once)."""
    bsz, cin, h, w = x_nchw.shape
    assert h == 64 and w == 64, "fc = Linear(out_channels*16*16, 128) implies a 64x64 input"

    # Factor-4 space-to-depth, channel-major sub-images, bf16 MXU operands.
    xs = (x_nchw.reshape(bsz, cin, _SUB, 4, _SUB, 4)
          .transpose(0, 3, 5, 1, 2, 4)
          .reshape(bsz, 16, cin, _NPIX)
          .astype(jnp.bfloat16))

    pooled2 = _fused_conv_tower(xs, params["w1"], params["b1"],
                                params["w2"], params["b2"])      # (B, C2, 256) bf16
    c2 = pooled2.shape[1]
    feats = pooled2.reshape(bsz, c2 * _NPIX)                     # PyTorch (c,h,w) order
    e = params["wfc"].shape[-1]
    k = feats.shape[-1]
    return pl.pallas_call(
        fc_kernel,
        out_shape=jax.ShapeDtypeStruct((bsz, e), jnp.float32),
        cost_estimate=pl.CostEstimate(
            flops=2 * bsz * k * e, transcendentals=0,
            bytes_accessed=feats.size * 2 + params["wfc"].size * 2 + bsz * e * 4),
    )(feats, params["wfc"], params["bfc"])


# --------------------------------------------------------------------------
# Pure-JAX reference (identical math to the PyTorch forward)
# --------------------------------------------------------------------------
def reference_forward(x, conv1_w, conv1_b, conv2_w, conv2_b, fc_w, fc_b):
    hp = lax.Precision.HIGHEST

    def conv_relu_pool(y, w, b):
        y = lax.conv_general_dilated(
            y, w, (1, 1), ((1, 1), (1, 1)),
            dimension_numbers=("NCHW", "OIHW", "NCHW"), precision=hp)
        y = jnp.maximum(y + b[None, :, None, None], 0.0)
        return lax.reduce_window(y, -jnp.inf, lax.max,
                                 (1, 1, 2, 2), (1, 1, 2, 2), "VALID")

    y = conv_relu_pool(x, conv1_w, conv1_b)
    y = conv_relu_pool(y, conv2_w, conv2_b)
    flat = y.reshape(y.shape[0], -1)
    return jnp.dot(flat, fc_w.T, precision=hp) + fc_b


if __name__ == "__main__":
    # fc = Linear(out_channels * 16 * 16, 128) after two 2x2 pools => input is 64x64.
    B, C_in, H, W = 2, 4, 64, 64
    C_mid, C_out, E = 32, 32, 128          # conv1 output is fixed at 32 by the module

    key = jax.random.PRNGKey(0)
    k = jax.random.split(key, 7)
    x = jax.random.normal(k[0], (B, C_in, H, W), jnp.float32)
    conv1_w = jax.random.normal(k[1], (C_mid, C_in, 3, 3), jnp.float32) * 0.1   # OIHW
    conv1_b = jax.random.normal(k[2], (C_mid,), jnp.float32) * 0.1
    conv2_w = jax.random.normal(k[3], (C_out, C_mid, 3, 3), jnp.float32) * 0.05
    conv2_b = jax.random.normal(k[4], (C_out,), jnp.float32) * 0.1
    fc_w = jax.random.normal(k[5], (E, C_out * 16 * 16), jnp.float32) * 0.01
    fc_b = jax.random.normal(k[6], (E,), jnp.float32) * 0.1

    _roll_sign()   # probe pltpu.roll's direction once, outside the jitted forward
    params = prepare_params(conv1_w, conv1_b, conv2_w, conv2_b, fc_w, fc_b)

    fwd = jax.jit(cnn_feat_expert_forward)
    out = jax.block_until_ready(fwd(x, params))

    ref = reference_forward(x, conv1_w, conv1_b, conv2_w, conv2_b, fc_w, fc_b)
    assert out.shape == (B, E), out.shape
    # bf16 MXU operands through both convs + FC (f32 accumulation) -> small mixed-precision err.
    err = float(jnp.max(jnp.abs(out - ref)))
    assert err < 4e-2, f"max abs err {err}"
    print("KERNEL_OK")
</pallas_src>

<mosaic_0001>
module attributes {stable_mosaic.version = 11 : i64} {
  func.func @_probe(%arg0: memref<8x128xi32, #tpu.memory_space<vmem>>, %arg1: memref<8x128xi32, #tpu.memory_space<vmem>>) attributes {dimension_semantics = [], scalar_prefetch = 0 : i64, scratch_operands = 0 : i64, tpu.core_type = #tpu.core_type<tc>} {
    %c0 = arith.constant 0 : index
    %c0_0 = arith.constant 0 : index
    %0 = vector.load %arg0[%c0, %c0_0] : memref<8x128xi32, #tpu.memory_space<vmem>>, vector<8x128xi32>
    %c1_i32 = arith.constant 1 : i32
    %1 = tpu.dynamic_rotate %0 by %c1_i32 dim 1 : vector<8x128xi32>, i32 -> vector<8x128xi32>
    %c0_1 = arith.constant 0 : index
    %c0_2 = arith.constant 0 : index
    %2 = vector.load %arg1[%c0_1, %c0_2] : memref<8x128xi32, #tpu.memory_space<vmem>>, vector<8x128xi32>
    tpu.vector_store %arg1[%c0_1, %c0_2], %1 {strides = array<i32>} : memref<8x128xi32, #tpu.memory_space<vmem>>, vector<8x128xi32>,
    return
  }
}

</mosaic_0001>

<bundles_post_ra>
// kernel: tpu_custom_call.1
= control target key start
LH: loop header
LB: loop body
LE: loop exit
PB: predicated region body
PF: predicated region fallthrough
CT: control target
= control target key end

     0   :  { %6 = vsyncpa [#allocation3], 0  ;;  %s118_s0 = inlined_call_operand.hbm [shape: s32[8,128], index: 0, kind: input, shape index: {}]   ;;  %s119_s1 = inlined_call_operand.hbm [shape: s32[8,128], index: 1, kind: output, shape index: {}]  }
   0x1   :  { %7 = vsyncpa [#allocation4], 0  ;;  %s13_s8 = sshll.u32 %s118_s0, 4  ;;  %s99_s9 = smov [#allocation2]   ;;  %s14_s8 = int_to_ptr.hbm [resolvable:$true] %s13_s8 }
   0x2   :  { %s15_s10 = sshll.u32 %s99_s9, 4  ;;  %s16_s10 = int_to_ptr.vmem [resolvable:$true] %s15_s10 }
   0x3   :  { %18 = dma.hbm_to_vmem [thread:$0]  %s14_s8, 128, %s16_s10, [#allocation3]  }
   0x4   :  { %95 = dma.done.wait [#allocation3], 128  }
   0x5   :  { %96 = vsyncadd [#allocation3], 4294967168  ;;  %v23_v0 = vld [vmem:[#allocation2] sm:$0xff]  ;;  %s100_s11 = smov 1   ;;  %s101_s12 = smov [#allocation5]  }
   0x6   :  { %24 = vrot.lane.b32.xlu0 %v23_v0, %s100_s11  ;;  %s32_s13 = sshll.u32 %s101_s12, 4  ;;  %s34_s16 = sshll.u32 %s119_s1, 4  ;;  %s33_s13 = int_to_ptr.vmem [resolvable:$true] %s32_s13  ;;  %s35_s16 = int_to_ptr.hbm [resolvable:$true] %s34_s16 }
  0x78   :  { %v25_v1 = vpop.permute.xlu0 %24 }
  0x79   :  { %26 = vst [vmem:[#allocation5] sm:$0xff] %v25_v1 }
  0x7a   :  { %37 = dma.vmem_to_hbm [thread:$0]  %s33_s13, 128, %s35_s16, [#allocation4]  }
  0x7b   :  { %97 = dma.done.wait [#allocation4], 128  }
  0x7c   :  { %98 = vsyncadd [#allocation4], 4294967168 }
  0x7d   :  { %42 = vsyncpa [#allocation3], 1 }
  0x7e   :  { %43 = vsyncpa [#allocation4], 1 }

</bundles_post_ra>
